<compile_context>
chip_gen: v7x
topology: tpu7x:2x2x1
jax: 0.10.0
libtpu: 0.0.40
codegen_flags: <defaults>
</compile_context>

<pallas_src>
import functools

import jax
import jax.numpy as jnp
from jax import lax
from jax.experimental import pallas as pl
from jax.experimental.pallas import tpu as pltpu


def _round_up(x, m):
    return (x + m - 1) // m * m


def _dwsep_kernel(x_ref, wdw_ref, wpw_ref, out_ref, *, K, stride, dilation, Wp, Lacc):
    """Fused depthwise KxK (groups=Cin) + pointwise 1x1 conv.

    x_ref  : (NB, Cin, Lin)   zero-padded image, spatial flattened onto the lane axis
    wdw_ref: (Cin, K*K)       depthwise taps per channel (single 2-D tile)
    wpw_ref: (Cout, Cin)      pointwise weights
    out_ref: (NB, Cout, Lacc) dense (stride-1, Wp-row-pitch) output; wrapper strips extra cols
    """
    NB, Cin, _ = x_ref.shape
    Cout = wpw_ref.shape[0]

    wdw = wdw_ref[...].astype(jnp.float32)          # (Cin, K*K), loaded once
    wpw = wpw_ref[...].astype(jnp.float32)          # (Cout, Cin)

    # ---- depthwise: each tap = constant lane-offset slice from VMEM + per-channel MAC (VPU) ----
    # Flattened spatial on lanes -> full lane density; slicing from the ref per tap keeps the
    # live set small (only acc stays live across the unrolled K*K loop).
    acc = jnp.zeros((NB, Cin, Lacc), jnp.float32)
    t = 0
    for kh in range(K):                             # K*K small & static -> fully unrolled
        for kw in range(K):
            off = kh * dilation * Wp + kw * dilation
            xs = x_ref[:, :, pl.ds(off, Lacc)].astype(jnp.float32)   # (NB, Cin, Lacc)
            wt = lax.slice(wdw, (0, t), (Cin, t + 1))                # (Cin, 1) per-channel scalar
            acc = acc + xs * wt[None, :, :]
            t += 1

    # ---- pointwise 1x1 on the VPU: Cout broadcast-MAC chains over the lane-dense acc ----
    # (Cin=4 -> Cout=8 would use <2% of the MXU array; VPU path skips NB x MXU latency +
    #  all pre-matmul relayouts.)
    wcols = [lax.slice(wpw, (0, ci), (Cout, ci + 1)) for ci in range(Cin)]   # hoisted (Cout, 1)
    for n in range(NB):
        y = jnp.zeros((Cout, Lacc), jnp.float32)
        for ci in range(Cin):
            row = acc[n, ci:ci + 1, :]              # (1, Lacc) lane-dense row
            y = y + wcols[ci] * row                 # (Cout,1)*(1,Lacc) broadcast MAC
        out_ref[n] = y.astype(out_ref.dtype)        # lane-dense store (width >= 2 full vregs)


def _vmem_capacity_bytes():
    try:
        info = pltpu.get_tpu_info()
        cap = getattr(info, "vmem_capacity_bytes", None)
        if cap:
            return int(cap)
    except Exception:
        pass
    return 64 << 20                                  # conservative: v7x has 64 MiB / TensorCore


def depthwise_separable_conv2d(x_nchw, w_dw, w_pw, *, stride=1, padding=0, dilation=1):
    """x_nchw: (N, Cin, H, W); w_dw: (Cin, 1, K, K); w_pw: (Cout, Cin, 1, 1).
    Returns NCHW output matching PyTorch DepthwiseSeparableConv2d.forward (bias=False)."""
    N, Cin, H, W = x_nchw.shape
    Cout = w_pw.shape[0]
    K = w_dw.shape[2]

    H_out = (H + 2 * padding - dilation * (K - 1) - 1) // stride + 1
    W_out = (W + 2 * padding - dilation * (K - 1) - 1) // stride + 1
    Hp, Wp = H + 2 * padding, W + 2 * padding

    H_need = (H_out - 1) * stride + 1               # dense (stride-1) rows the output reads
    Lacc = H_need * Wp                              # dense flat output width (extra cols stripped)
    Lin = _round_up(Hp * Wp + (K - 1) * dilation, 128)   # lane headroom for the largest tap offset

    # --- wrapper-side layout plumbing (tiny tensors; keeps the kernel relayout-free) ---
    # zero-pad once in XLA, then a free row-major collapse puts (Hp*Wp) onto the lane axis
    xp = jnp.pad(x_nchw, ((0, 0), (0, 0), (padding, padding), (padding, padding)))
    xf = xp.reshape(N, Cin, Hp * Wp)
    xf = jnp.pad(xf, ((0, 0), (0, 0), (0, Lin - Hp * Wp)))

    wdw = w_dw[:, 0, :, :].reshape(Cin, K * K)      # (Cin, K*K): one 2-D tile, no (1,1) tails
    wpw = w_pw[:, :, 0, 0]                          # (Cout, Cin)

    # --- generation-aware batch folding / grid ---
    vmem_cap = _vmem_capacity_bytes()
    per_image = 4 * (2 * Cin * Lin + 2 * Cout * Lacc        # double-buffered in/out blocks
                     + 2 * Cin * Lacc + Cout * Lacc + Cin * Lin)   # acc / y / live slices
    budget = max(per_image, min(8 << 20, (vmem_cap - (16 << 20)) // 8))
    NB = max(1, min(N, 16, budget // per_image))    # cap 16 bounds acc live range / trace size
    if N >= 2:
        NB = min(NB, N // 2)                        # >=2 grid steps: v7x megacore + pipelining
    while N % NB:
        NB -= 1
    grid = (N // NB,)

    est = per_image * NB + (Cin * K * K + Cout * Cin) * 4 + (2 << 20)
    vmem_limit = int(min(int(0.8 * vmem_cap), max(est, 32 << 20)))

    kernel = functools.partial(_dwsep_kernel, K=K, stride=stride,
                               dilation=dilation, Wp=Wp, Lacc=Lacc)

    out_dense = pl.pallas_call(
        kernel,
        out_shape=jax.ShapeDtypeStruct((N, Cout, Lacc), x_nchw.dtype),
        grid_spec=pltpu.PrefetchScalarGridSpec(
            num_scalar_prefetch=0,
            grid=grid,
            in_specs=[
                pl.BlockSpec((NB, Cin, Lin), lambda g: (g, 0, 0)),
                pl.BlockSpec((Cin, K * K), lambda g: (0, 0)),
                pl.BlockSpec((Cout, Cin), lambda g: (0, 0)),
            ],
            out_specs=pl.BlockSpec((NB, Cout, Lacc), lambda g: (g, 0, 0)),
        ),
        compiler_params=pltpu.CompilerParams(
            dimension_semantics=("parallel",),
            vmem_limit_bytes=vmem_limit),
    )(xf, wdw, wpw)

    # strip the Wp-pitch garbage columns and apply the stride once (tiny XLA slice)
    out = out_dense.reshape(N, Cout, H_need, Wp)
    out = out[:, :, ::stride, ::stride][:, :, :H_out, :W_out]
    return out


def _reference(x_nchw, w_dw, w_pw, *, stride, padding, dilation):
    """Pure-JAX reference (lax conv) mirroring the PyTorch module."""
    Cin = x_nchw.shape[1]
    dw = lax.conv_general_dilated(
        x_nchw, w_dw,
        window_strides=(stride, stride),
        padding=((padding, padding), (padding, padding)),
        rhs_dilation=(dilation, dilation),
        dimension_numbers=("NCHW", "OIHW", "NCHW"),
        feature_group_count=Cin)
    pw = lax.conv_general_dilated(
        dw, w_pw,
        window_strides=(1, 1), padding="VALID",
        dimension_numbers=("NCHW", "OIHW", "NCHW"))
    return pw


if __name__ == "__main__":
    # module config: in_channels=4, out_channels=8, kernel_size=3, stride=1, padding=1
    N, Cin, H, W = 2, 4, 16, 16
    Cout, K = 8, 3
    stride, padding, dilation = 1, 1, 1

    key = jax.random.PRNGKey(0)
    kx, kd, kp = jax.random.split(key, 3)
    x = jax.random.normal(kx, (N, Cin, H, W), dtype=jnp.float32)
    w_dw = jax.random.normal(kd, (Cin, 1, K, K), dtype=jnp.float32) * 0.1    # depthwise (C,1,K,K)
    w_pw = jax.random.normal(kp, (Cout, Cin, 1, 1), dtype=jnp.float32) * 0.1  # pointwise (Co,Ci,1,1)

    out = depthwise_separable_conv2d(x, w_dw, w_pw,
                                     stride=stride, padding=padding, dilation=dilation)
    out = jax.block_until_ready(out)

    ref = _reference(x, w_dw, w_pw, stride=stride, padding=padding, dilation=dilation)
    assert out.shape == ref.shape, (out.shape, ref.shape)
    assert jnp.allclose(out, ref, atol=1e-4, rtol=1e-4), "mismatch vs reference conv"

    print("KERNEL_OK")
</pallas_src>

<mosaic_0001>
module attributes {stable_mosaic.version = 11 : i64} {
  func.func @_dwsep_kernel(%arg0: i32, %arg1: memref<1x4x384xf32, #tpu.memory_space<vmem>>, %arg2: memref<4x9xf32, #tpu.memory_space<vmem>>, %arg3: memref<8x4xf32, #tpu.memory_space<vmem>>, %arg4: memref<1x8x288xf32, #tpu.memory_space<vmem>>) attributes {dimension_semantics = [#tpu.dimension_semantics<parallel>], iteration_bounds = array<i64: 2>, scalar_prefetch = 0 : i64, scratch_operands = 0 : i64, tpu.core_type = #tpu.core_type<tc>, window_params = [{transform_indices = @transform_0, window_bounds = array<i64: 1, 4, 384>}, {pipeline_mode = #tpu.pipeline_mode<synchronous>, transform_indices = @transform_1, window_bounds = array<i64: 4, 9>}, {pipeline_mode = #tpu.pipeline_mode<synchronous>, transform_indices = @transform_2, window_bounds = array<i64: 8, 4>}, {transform_indices = @transform_3, window_bounds = array<i64: 1, 8, 288>}]} {
    %c0 = arith.constant 0 : index
    %c0_0 = arith.constant 0 : index
    %0 = vector.load %arg2[%c0, %c0_0] : memref<4x9xf32, #tpu.memory_space<vmem>>, vector<4x9xf32>
    %c0_1 = arith.constant 0 : index
    %c0_2 = arith.constant 0 : index
    %1 = vector.load %arg3[%c0_1, %c0_2] : memref<8x4xf32, #tpu.memory_space<vmem>>, vector<8x4xf32>
    %cst = arith.constant 0.000000e+00 : f32
    %2 = vector.broadcast %cst : f32 to vector<1x4x288xf32>
    %c0_3 = arith.constant 0 : index
    %c0_4 = arith.constant 0 : index
    %c0_5 = arith.constant 0 : index
    %3 = vector.load %arg1[%c0_3, %c0_4, %c0_5] : memref<1x4x384xf32, #tpu.memory_space<vmem>>, vector<1x4x288xf32>
    %4 = vector.extract_strided_slice %0 {offsets = [0, 0], sizes = [4, 1], strides = [1, 1]} : vector<4x9xf32> to vector<4x1xf32>
    %5 = vector.shape_cast %4 : vector<4x1xf32> to vector<1x4x1xf32>
    %6 = vector.broadcast %5 : vector<1x4x1xf32> to vector<1x4x288xf32>
    %7 = arith.mulf %3, %6 : vector<1x4x288xf32>
    %8 = arith.addf %2, %7 : vector<1x4x288xf32>
    %c0_6 = arith.constant 0 : index
    %c0_7 = arith.constant 0 : index
    %c1 = arith.constant 1 : index
    %9 = vector.load %arg1[%c0_6, %c0_7, %c1] : memref<1x4x384xf32, #tpu.memory_space<vmem>>, vector<1x4x288xf32>
    %10 = vector.extract_strided_slice %0 {offsets = [0, 1], sizes = [4, 1], strides = [1, 1]} : vector<4x9xf32> to vector<4x1xf32>
    %11 = vector.shape_cast %10 : vector<4x1xf32> to vector<1x4x1xf32>
    %12 = vector.broadcast %11 : vector<1x4x1xf32> to vector<1x4x288xf32>
    %13 = arith.mulf %9, %12 : vector<1x4x288xf32>
    %14 = arith.addf %8, %13 : vector<1x4x288xf32>
    %c0_8 = arith.constant 0 : index
    %c0_9 = arith.constant 0 : index
    %c2 = arith.constant 2 : index
    %15 = vector.load %arg1[%c0_8, %c0_9, %c2] : memref<1x4x384xf32, #tpu.memory_space<vmem>>, vector<1x4x288xf32>
    %16 = vector.extract_strided_slice %0 {offsets = [0, 2], sizes = [4, 1], strides = [1, 1]} : vector<4x9xf32> to vector<4x1xf32>
    %17 = vector.shape_cast %16 : vector<4x1xf32> to vector<1x4x1xf32>
    %18 = vector.broadcast %17 : vector<1x4x1xf32> to vector<1x4x288xf32>
    %19 = arith.mulf %15, %18 : vector<1x4x288xf32>
    %20 = arith.addf %14, %19 : vector<1x4x288xf32>
    %c0_10 = arith.constant 0 : index
    %c0_11 = arith.constant 0 : index
    %c18 = arith.constant 18 : index
    %21 = vector.load %arg1[%c0_10, %c0_11, %c18] : memref<1x4x384xf32, #tpu.memory_space<vmem>>, vector<1x4x288xf32>
    %22 = vector.extract_strided_slice %0 {offsets = [0, 3], sizes = [4, 1], strides = [1, 1]} : vector<4x9xf32> to vector<4x1xf32>
    %23 = vector.shape_cast %22 : vector<4x1xf32> to vector<1x4x1xf32>
    %24 = vector.broadcast %23 : vector<1x4x1xf32> to vector<1x4x288xf32>
    %25 = arith.mulf %21, %24 : vector<1x4x288xf32>
    %26 = arith.addf %20, %25 : vector<1x4x288xf32>
    %c0_12 = arith.constant 0 : index
    %c0_13 = arith.constant 0 : index
    %c19 = arith.constant 19 : index
    %27 = vector.load %arg1[%c0_12, %c0_13, %c19] : memref<1x4x384xf32, #tpu.memory_space<vmem>>, vector<1x4x288xf32>
    %28 = vector.extract_strided_slice %0 {offsets = [0, 4], sizes = [4, 1], strides = [1, 1]} : vector<4x9xf32> to vector<4x1xf32>
    %29 = vector.shape_cast %28 : vector<4x1xf32> to vector<1x4x1xf32>
    %30 = vector.broadcast %29 : vector<1x4x1xf32> to vector<1x4x288xf32>
    %31 = arith.mulf %27, %30 : vector<1x4x288xf32>
    %32 = arith.addf %26, %31 : vector<1x4x288xf32>
    %c0_14 = arith.constant 0 : index
    %c0_15 = arith.constant 0 : index
    %c20 = arith.constant 20 : index
    %33 = vector.load %arg1[%c0_14, %c0_15, %c20] : memref<1x4x384xf32, #tpu.memory_space<vmem>>, vector<1x4x288xf32>
    %34 = vector.extract_strided_slice %0 {offsets = [0, 5], sizes = [4, 1], strides = [1, 1]} : vector<4x9xf32> to vector<4x1xf32>
    %35 = vector.shape_cast %34 : vector<4x1xf32> to vector<1x4x1xf32>
    %36 = vector.broadcast %35 : vector<1x4x1xf32> to vector<1x4x288xf32>
    %37 = arith.mulf %33, %36 : vector<1x4x288xf32>
    %38 = arith.addf %32, %37 : vector<1x4x288xf32>
    %c0_16 = arith.constant 0 : index
    %c0_17 = arith.constant 0 : index
    %c36 = arith.constant 36 : index
    %39 = vector.load %arg1[%c0_16, %c0_17, %c36] : memref<1x4x384xf32, #tpu.memory_space<vmem>>, vector<1x4x288xf32>
    %40 = vector.extract_strided_slice %0 {offsets = [0, 6], sizes = [4, 1], strides = [1, 1]} : vector<4x9xf32> to vector<4x1xf32>
    %41 = vector.shape_cast %40 : vector<4x1xf32> to vector<1x4x1xf32>
    %42 = vector.broadcast %41 : vector<1x4x1xf32> to vector<1x4x288xf32>
    %43 = arith.mulf %39, %42 : vector<1x4x288xf32>
    %44 = arith.addf %38, %43 : vector<1x4x288xf32>
    %c0_18 = arith.constant 0 : index
    %c0_19 = arith.constant 0 : index
    %c37 = arith.constant 37 : index
    %45 = vector.load %arg1[%c0_18, %c0_19, %c37] : memref<1x4x384xf32, #tpu.memory_space<vmem>>, vector<1x4x288xf32>
    %46 = vector.extract_strided_slice %0 {offsets = [0, 7], sizes = [4, 1], strides = [1, 1]} : vector<4x9xf32> to vector<4x1xf32>
    %47 = vector.shape_cast %46 : vector<4x1xf32> to vector<1x4x1xf32>
    %48 = vector.broadcast %47 : vector<1x4x1xf32> to vector<1x4x288xf32>
    %49 = arith.mulf %45, %48 : vector<1x4x288xf32>
    %50 = arith.addf %44, %49 : vector<1x4x288xf32>
    %c0_20 = arith.constant 0 : index
    %c0_21 = arith.constant 0 : index
    %c38 = arith.constant 38 : index
    %51 = vector.load %arg1[%c0_20, %c0_21, %c38] : memref<1x4x384xf32, #tpu.memory_space<vmem>>, vector<1x4x288xf32>
    %52 = vector.extract_strided_slice %0 {offsets = [0, 8], sizes = [4, 1], strides = [1, 1]} : vector<4x9xf32> to vector<4x1xf32>
    %53 = vector.shape_cast %52 : vector<4x1xf32> to vector<1x4x1xf32>
    %54 = vector.broadcast %53 : vector<1x4x1xf32> to vector<1x4x288xf32>
    %55 = arith.mulf %51, %54 : vector<1x4x288xf32>
    %56 = arith.addf %50, %55 : vector<1x4x288xf32>
    %57 = vector.extract_strided_slice %1 {offsets = [0, 0], sizes = [8, 1], strides = [1, 1]} : vector<8x4xf32> to vector<8x1xf32>
    %58 = vector.extract_strided_slice %1 {offsets = [0, 1], sizes = [8, 1], strides = [1, 1]} : vector<8x4xf32> to vector<8x1xf32>
    %59 = vector.extract_strided_slice %1 {offsets = [0, 2], sizes = [8, 1], strides = [1, 1]} : vector<8x4xf32> to vector<8x1xf32>
    %60 = vector.extract_strided_slice %1 {offsets = [0, 3], sizes = [8, 1], strides = [1, 1]} : vector<8x4xf32> to vector<8x1xf32>
    %cst_22 = arith.constant 0.000000e+00 : f32
    %61 = vector.broadcast %cst_22 : f32 to vector<8x288xf32>
    %62 = vector.extract_strided_slice %56 {offsets = [0, 0, 0], sizes = [1, 1, 288], strides = [1, 1, 1]} : vector<1x4x288xf32> to vector<1x1x288xf32>
    %63 = vector.shape_cast %62 : vector<1x1x288xf32> to vector<1x288xf32>
    %64 = vector.broadcast %57 : vector<8x1xf32> to vector<8x288xf32>
    %65 = vector.broadcast %63 : vector<1x288xf32> to vector<8x288xf32>
    %66 = arith.mulf %64, %65 : vector<8x288xf32>
    %67 = arith.addf %61, %66 : vector<8x288xf32>
    %68 = vector.extract_strided_slice %56 {offsets = [0, 1, 0], sizes = [1, 1, 288], strides = [1, 1, 1]} : vector<1x4x288xf32> to vector<1x1x288xf32>
    %69 = vector.shape_cast %68 : vector<1x1x288xf32> to vector<1x288xf32>
    %70 = vector.broadcast %58 : vector<8x1xf32> to vector<8x288xf32>
    %71 = vector.broadcast %69 : vector<1x288xf32> to vector<8x288xf32>
    %72 = arith.mulf %70, %71 : vector<8x288xf32>
    %73 = arith.addf %67, %72 : vector<8x288xf32>
    %74 = vector.extract_strided_slice %56 {offsets = [0, 2, 0], sizes = [1, 1, 288], strides = [1, 1, 1]} : vector<1x4x288xf32> to vector<1x1x288xf32>
    %75 = vector.shape_cast %74 : vector<1x1x288xf32> to vector<1x288xf32>
    %76 = vector.broadcast %59 : vector<8x1xf32> to vector<8x288xf32>
    %77 = vector.broadcast %75 : vector<1x288xf32> to vector<8x288xf32>
    %78 = arith.mulf %76, %77 : vector<8x288xf32>
    %79 = arith.addf %73, %78 : vector<8x288xf32>
    %80 = vector.extract_strided_slice %56 {offsets = [0, 3, 0], sizes = [1, 1, 288], strides = [1, 1, 1]} : vector<1x4x288xf32> to vector<1x1x288xf32>
    %81 = vector.shape_cast %80 : vector<1x1x288xf32> to vector<1x288xf32>
    %82 = vector.broadcast %60 : vector<8x1xf32> to vector<8x288xf32>
    %83 = vector.broadcast %81 : vector<1x288xf32> to vector<8x288xf32>
    %84 = arith.mulf %82, %83 : vector<8x288xf32>
    %85 = arith.addf %79, %84 : vector<8x288xf32>
    %c0_23 = arith.constant 0 : index
    %c0_24 = arith.constant 0 : index
    %c0_25 = arith.constant 0 : index
    %86 = vector.load %arg4[%c0_23, %c0_24, %c0_25] : memref<1x8x288xf32, #tpu.memory_space<vmem>>, vector<1x8x288xf32>
    %87 = vector.shape_cast %86 : vector<1x8x288xf32> to vector<8x288xf32>
    %88 = vector.shape_cast %85 : vector<8x288xf32> to vector<1x8x288xf32>
    tpu.vector_store %arg4[%c0_23, %c0_24, %c0_25], %88 {strides = array<i32>} : memref<1x8x288xf32, #tpu.memory_space<vmem>>, vector<1x8x288xf32>,
    return
  }
  func.func @transform_0(%arg0: i32) -> (i32, i32, i32) {
    %c0_i32 = arith.constant 0 : i32
    %c0_i32_0 = arith.constant 0 : i32
    %c0_i32_1 = arith.constant 0 : i32
    return %arg0, %c0_i32, %c0_i32_0 : i32, i32, i32
  }
  func.func @transform_1(%arg0: i32) -> (i32, i32) {
    %c0_i32 = arith.constant 0 : i32
    %c0_i32_0 = arith.constant 0 : i32
    %c0_i32_1 = arith.constant 0 : i32
    return %c0_i32, %c0_i32_0 : i32, i32
  }
  func.func @transform_2(%arg0: i32) -> (i32, i32) {
    %c0_i32 = arith.constant 0 : i32
    %c0_i32_0 = arith.constant 0 : i32
    %c0_i32_1 = arith.constant 0 : i32
    return %c0_i32, %c0_i32_0 : i32, i32
  }
  func.func @transform_3(%arg0: i32) -> (i32, i32, i32) {
    %c0_i32 = arith.constant 0 : i32
    %c0_i32_0 = arith.constant 0 : i32
    %c0_i32_1 = arith.constant 0 : i32
    return %arg0, %c0_i32, %c0_i32_0 : i32, i32, i32
  }
}

</mosaic_0001>

<bundles_post_ra>
// kernel: tpu_custom_call.1
= control target key start
LH: loop header
LB: loop body
LE: loop exit
PB: predicated region body
PF: predicated region fallthrough
CT: control target
= control target key end

     0   :  { %8 = vsyncpa [#allocation3], 0  ;;  %s1093_s0 = inlined_call_operand.hbm [shape: f32[2,4,384], index: 0, kind: input, shape index: {}]   ;;  %s1094_s1 = inlined_call_operand.vmem [shape: f32[4,9], index: 1, kind: input, shape index: {}]   ;;  %s1095_s2 = inlined_call_operand.vmem [shape: f32[8,4], index: 2, kind: input, shape index: {}]   ;;  %s1096_s3 = inlined_call_operand.hbm [shape: f32[2,8,288], index: 3, kind: output, shape index: {}]  }
   0x1   :  { %10 = vsyncpa [#allocation3 + $0x1], 0 }
   0x2   :  { %11 = vsyncpa [#allocation4], 0 }
   0x3   :  { %13 = vsyncpa [#allocation4 + $0x1], 0  ;;  %s900_s12 = smov 0   ;;  %s902_s13 = smov 0  }
   0x4   :  { %s904_s14 = smov 0   ;;  %s906_s15 = smov 0  }
   0x5 LB: > { %s921_s16 = sadd.s32 4294967295, %s858_s15   ;;  %s672_s17 = sadd.s32 4294967294, %s858_s15   ;;  %s858_s15 = sphi %s906_s15, %s1110_s15   ;;  %s854_s14 = sphi %s904_s14, %s1109_s14   ;;  %s850_s13 = sphi %s902_s13, %s1108_s13   ;;  %s846_s12 = sphi %s900_s12, %s1107_s12  }
   0x6   : > { %s925_s18 = sadd.s32 1, %s858_s15   ;;  %s26_s19 = sadd.s32 1, %s854_s14 }
   0x7   : > { %s23_s20 = ssub.s32 %s858_s15, %s925_s18  ;;  %p33_p0 = scmp.ne.s32.totalorder %s854_s14, %s850_s13 }
   0x8   : > { %p24_p1 = scmp.eq.s32.totalorder %s23_s20, 0  ;;  %p34_p2 = scmp.eq.s32.totalorder %s858_s15, 0 }
   0x9   : > { %p39_p3 = scmp.ne.s32.totalorder %s850_s13, %s846_s12  ;;  %p40_p4 = scmp.eq.s32.totalorder %s921_s16, 0 }
   0xa   : > { %s937_s21 = scalar_select %p24_p1, %s854_s14, %s26_s19  }
   0xb   : > { %p35_p5 = por %p34_p2, %p33_p0  ;;  %p939_p6 = por %p40_p4, %p39_p3 }
   0xc   : > { %p105_p7 = scmp.eq.s32.totalorder %s921_s16, 1  ;;  %p111_p8 = scmp.eq.s32.totalorder %s672_s17, 1 }
   0xd   : > { %p697_p10 = scmp.lt.s32.totalorder %s858_s15, 2  ;;  %s137_s25 = sand.u32 1, %s854_s14  }
   0xe   : > { %p946_p11 = por %p105_p7, %p33_p0  ;;  %p950_p12 = por %p111_p8, %p39_p3 }
   0xf   : > { %s681_s26 = smul.u32 192, %s858_s15  ;;  %p961_p13 = pnand %p697_p10, %p35_p5 }
  0x10   : > { %s1099_s23 = scalar_select %p946_p11, 1, 0 }
  0x11   : > { %s1100_s24 = scalar_select %p950_p12, 1, 0 }
  0x12   : > { %s680_s27 = smul.u32 12, %s137_s25  ;;  %s959_s30 = scalar_lea.hbm %s1093_s0, %s681_s26 }
  0x13   : > { %s138_s7 = scalar_lea.sflag [#allocation3], %s137_s25  ;;  %s762_s8 = scalar_lea.hbm %s959_s30, 192 }
  0x14   : > { %s141_s5 = scalar_lea.vmem [#allocation2], %s680_s27  ;;  %p763_p2 = scmp.ne.s32.totalorder %s959_s30, %s762_s8 }
  0x15   : > { %s149_s6 = sshll.u32 %s141_s5, 4  ;;  %p764_p3 = pneg %p961_p13  ;;  %s966_s6 = int_to_ptr.vmem [resolvable:$true] %s149_s6 }
  0x16   : > { %s767_s11 = scalar_lea.hbm %s1093_s0, 384  ;;  %p768_p7 = scmp.lt.u32.totalorder %s959_s30, %s1093_s0 }
  0x17   : > { %p765_p4 = pnand %p764_p3, %p763_p2  ;;  %p769_p8 = scmp.lt.u32.totalorder %s767_s11, %s762_s8 }
  0x18   : > { %p771_p9 = scmp.lt.u32.totalorder %s762_s8, %s959_s30 }
  0x19   : > { %p766_p5 = pneg %p765_p4  ;;  %p770_p10 = por %p769_p8, %p768_p7 }
  0x1b   : > { %p772_p0 = por %p771_p9, %p770_p10 }
  0x1d   : > { %p773_p1 = pnand %p772_p0, %p766_p5 }
  0x1f   : > { %776 = shalt.err (!%p773_p1)
}
  0x20   : > { %s777_s20 = scalar_lea.vmem %s966_s6, 192  ;;  %s860_s25 = smov [#allocation2]  }
  0x21   : > { %p778_p2 = scmp.ne.s32.totalorder %s966_s6, %s777_s20  ;;  %s782_s26 = sshll.u32 %s860_s25, 4  ;;  %s783_s26 = int_to_ptr.vmem [resolvable:$false] %s782_s26 }
  0x22   : > { %s784_s27 = scalar_lea.vmem %s783_s26, 384  ;;  %p785_p11 = scmp.lt.s32.totalorder %s966_s6, %s783_s26 }
  0x23   : > { %p780_p4 = pnand %p778_p2, %p764_p3  ;;  %p786_p7 = scmp.lt.s32.totalorder %s784_s27, %s777_s20 }
  0x25   : > { %p781_p12 = pneg %p780_p4  ;;  %p787_p8 = por %p786_p7, %p785_p11 }
  0x27   : > { %p788_p9 = pnand %p787_p8, %p781_p12 }
  0x29   : > { %791 = shalt.err (!%p788_p9)
}
  0x2a   : > { %692 = dma.hbm_to_vmem [thread:$0]  (!%p961_p13), %s959_s30, 192, %s966_s6, %s138_s7  }
  0x2b   : > { %p1102_p0 = scmp.lt.s32.totalorder %s858_s15, 3  ;;  %p1103_p1 = scmp.ge.s32.totalorder %s858_s15, 1 }
  0x2d   : > { %p155_p3 = pnand %p1103_p1, %p1102_p0 }
  0x2e   : > { %s999_s28 = sand.u32 (!%p155_p3), 1, %s850_s13  }
  0x2f   : > { %158 = sbr.rel (%p155_p3) target bundleno = 377 (0x179), region = 32  ;;  %s161_s5 = scalar_lea.sflag (!%p155_p3), [#allocation3], %s999_s28 }
  0x30   : > { %s682_s29 = smul.u32 (!%p155_p3), 12, %s999_s28 }
  0x32   : > { %s1003_s8 = scalar_lea.vmem (!%p155_p3), [#allocation2], %s682_s29 }
  0x36   : > { %837 = dma.done.wait (%p939_p6), %s161_s5, 192  }
  0x37   : > { %839 = vsyncadd (%p939_p6), %s161_s5, 4294967104  ;;  %v861_v0 = vmov 1   ;;  %v862_v1 = vmov 3   ;;  %v187_v2 = vld [vmem:[%s1094_s1] sm:$0xf]  ;;  %v863_v3 = vmov 2   ;;  %v198_v12 = vlaneseq }
  0x38   : > { %749 = vset.pattern.permute.xlu0 %v861_v0  ;;  %751 = vset.pattern.permute.xlu1 %v862_v1  ;;  %v864_v4 = vmov 4   ;;  %v865_v5 = vmov 5   ;;  %v866_v6 = vmov 6   ;;  %v867_v7 = vmov 7   ;;  %v189_v16 = vld [vmem:[%s1003_s8] sm:$0xff]  ;;  %s871_s22 = smov 127  }
  0x39   : > { %208 = vperm.xlu0 %749, %v187_v2   ;;  %265 = vperm.xlu1 %751, %v187_v2   ;;  %v868_v8 = vmov 0   ;;  %v869_v9 = vmov 8   ;;  %v870_v10 = vmov 839922192   ;;  %v1014_v14 = vshrl.u32 %v198_v12, 7  ;;  %s872_s6 = smov 126  }
  0x3a   : > { %v196_v11 = vunpack.c.l.s4 %v870_v10  ;;  %v190_v21 = vld [vmem:[%s1003_s8 + $0x8] sm:$0xf]  ;;  %s873_s7 = smov 110   ;;  %s874_s9 = smov 109   ;;  %v188_v54 = vld [vmem:[%s1095_s2] sm:$0xff]  ;;  %vm228_vm0 = vcmask 1043456  }
  0x3b   : > { %s875_s10 = smov 108   ;;  %s876_s11 = smov 92   ;;  %vm230_vm1 = vcmask 1039360   ;;  %vm258_vm2 = vcmask 1031168   ;;  %vm286_vm3 = vcmask 900096   ;;  %vm314_vm4 = vcmask 891904  }
  0x3c   : > { %v197_v13 = vunpack.c.0.s8 %v196_v11  ;;  %s877_s17 = smov 91   ;;  %s878_s19 = smov 90   ;;  %vm342_vm5 = vcmask 883712   ;;  %vm370_vm6 = vcmask 752640   ;;  %vm398_vm7 = vcmask 744448  }
  0x3d   : > { %750 = vset.pattern.permute.xlu0 %v863_v3  ;;  %752 = vset.pattern.permute.xlu1 %v864_v4  ;;  %vm426_vm8 = vcmask 736256   ;;  %s683_s26 = smul.u32 24, %s999_s28  ;;  %vm585_vm9 = vcmask 261120   ;;  %p1104_p11 = scmp.ne.s32.totalorder %s1099_s23, 0 }
  0x3e   : > { %237 = vperm.xlu0 %750, %v187_v2   ;;  %293 = vperm.xlu1 %752, %v187_v2   ;;  %v200_v15 = vsub.s32 %v197_v13, %v1014_v14  ;;  %s684_s27 = smul.u32 384, %s921_s16  ;;  %s588_s16 = scalar_lea.sflag [#allocation4], %s999_s28 }
  0x3f   : > { %s186_s29 = scalar_lea.vmem [#allocation5], %s683_s26 }
  0x40   : > { %s602_s5 = sshll.u32 %s186_s29, 4  ;;  %s1049_s4 = scalar_lea.hbm %s1096_s3, %s684_s27  ;;  %s1051_s5 = int_to_ptr.vmem [resolvable:$true] %s602_s5 }
  0x42   : > { %753 = vset.pattern.permute.xlu1 %v865_v5  ;;  %754 = vset.pattern.permute.xlu0 %v866_v6 }
  0x43   : > { %321 = vperm.xlu1 %753, %v187_v2   ;;  %349 = vperm.xlu0 %754, %v187_v2  }
  0x47   : > { %755 = vset.pattern.permute.xlu1 %v867_v7  ;;  %757 = vset.pattern.permute.xlu0 %v868_v8 }
  0x48   : > { %377 = vperm.xlu1 %755, %v187_v2   ;;  %193 = vperm.xlu0 %757, %v187_v2  }
  0x4c   : > { %756 = vset.pattern.permute.xlu1 %v869_v9 }
  0x4d   : > { %405 = vperm.xlu1 %756, %v187_v2  }
  0x51   : > { %758 = vset.pattern.permute.xlu1 %v861_v0 }
  0xb8   : > { %v209_v17 = vpop.permute.xlu0 %208  ;;  %v266_v18 = vpop.permute.xlu1 %265 }
  0xb9   : > { %v216_v19 = vrot.slane %v209_v17, %v200_v15  ;;  %v273_v25 = vrot.slane %v266_v18, %v200_v15 }
  0xbb   : > { %v218_v20 = vmul.f32 %v216_v19, %v189_v16  ;;  %v219_v26 = vmul.f32 %v216_v19, %v190_v21  ;;  %v275_v28 = vmul.f32 %v273_v25, %v189_v16  ;;  %v276_v35 = vmul.f32 %v273_v25, %v190_v21 }
  0xbd   : > { %222 = vrot.lane.b32.xlu1 %v218_v20, %s871_s22  ;;  %v238_v22 = vpop.permute.xlu0 %237  ;;  %v294_v23 = vpop.permute.xlu1 %293 }
  0xbe   : > { %v245_v24 = vrot.slane %v238_v22, %v200_v15  ;;  %v301_v29 = vrot.slane %v294_v23, %v200_v15 }
  0xc0   : > { %v247_v27 = vmul.f32 %v245_v24, %v189_v16  ;;  %v248_v30 = vmul.f32 %v245_v24, %v190_v21  ;;  %v303_v33 = vmul.f32 %v301_v29, %v189_v16  ;;  %v304_v43 = vmul.f32 %v301_v29, %v190_v21 }
  0xc1   : > { %224 = vrot.lane.b32.xlu1 %v219_v26, %s871_s22  ;;  %s792_s22 = scalar_lea.vmem %s1051_s5, 384 }
  0xc2   : > { %251 = vrot.lane.b32.xlu0 %v247_v27, %s872_s6  ;;  %v322_v31 = vpop.permute.xlu1 %321  ;;  %v350_v32 = vpop.permute.xlu0 %349  ;;  %p793_p6 = scmp.ne.s32.totalorder %s1051_s5, %s792_s22 }
  0xc3   : > { %v329_v34 = vrot.slane %v322_v31, %v200_v15  ;;  %v357_v40 = vrot.slane %v350_v32, %v200_v15 }
  0xc4   : > { %p794_p12 = pnand %p793_p6, %p1104_p11 }
  0xc5   : > { %253 = vrot.lane.b32.xlu1 %v248_v30, %s872_s6  ;;  %v331_v39 = vmul.f32 %v329_v34, %v189_v16  ;;  %v359_v44 = vmul.f32 %v357_v40, %v189_v16  ;;  %v332_v46 = vmul.f32 %v329_v34, %v190_v21  ;;  %v360_v50 = vmul.f32 %v357_v40, %v190_v21  ;;  %s879_s6 = smov [#allocation5]  }
  0xc6   : > { %279 = vrot.lane.b32.xlu0 %v275_v28, %s873_s7  ;;  %p795_p13 = pneg %p794_p12 }
  0xc7   : > { %v194_v36 = vpop.permute.xlu0 %193  ;;  %v378_v38 = vpop.permute.xlu1 %377 }
  0xc8   : > { %v201_v37 = vrot.slane %v194_v36, %v200_v15  ;;  %v385_v45 = vrot.slane %v378_v38, %v200_v15 }
  0xc9   : > { %281 = vrot.lane.b32.xlu1 %v276_v35, %s873_s7  ;;  %s796_s7 = sshll.u32 %s879_s6, 4  ;;  %s797_s7 = int_to_ptr.vmem [resolvable:$false] %s796_s7 }
  0xca   : > { %307 = vrot.lane.b32.xlu0 %v303_v33, %s874_s9  ;;  %v1019_v41 = vmul.f32 %v201_v37, %v189_v16  ;;  %v204_v42 = vmul.f32 %v201_v37, %v190_v21  ;;  %v387_v48 = vmul.f32 %v385_v45, %v189_v16  ;;  %v388_v52 = vmul.f32 %v385_v45, %v190_v21  ;;  %p799_p5 = scmp.lt.s32.totalorder %s1051_s5, %s797_s7 }
  0xcc   : > { %v406_v47 = vpop.permute.xlu1 %405 }
  0xcd   : > { %309 = vrot.lane.b32.xlu1 %v304_v43, %s874_s9  ;;  %v413_v49 = vrot.slane %v406_v47, %v200_v15  ;;  %s798_s9 = scalar_lea.vmem %s797_s7, 768 }
  0xce   : > { %335 = vrot.lane.b32.xlu0 %v331_v39, %s875_s10  ;;  %p800_p10 = scmp.lt.s32.totalorder %s798_s9, %s792_s22 }
  0xcf   : > { %v415_v51 = vmul.f32 %v413_v49, %v189_v16  ;;  %v416_v53 = vmul.f32 %v413_v49, %v190_v21 }
  0xd0   : > { %p801_p2 = por %p800_p10, %p799_p5 }
  0xd1   : > { %337 = vrot.lane.b32.xlu1 %v332_v46, %s875_s10 }
  0xd2   : > { %363 = vrot.lane.b32.xlu0 %v359_v44, %s876_s11  ;;  %p802_p4 = pnand %p801_p2, %p795_p13 }
  0xd5   : > { %365 = vrot.lane.b32.xlu1 %v360_v50, %s876_s11 }
  0xd6   : > { %391 = vrot.lane.b32.xlu0 %v387_v48, %s877_s17 }
  0xd9   : > { %393 = vrot.lane.b32.xlu1 %v388_v52, %s877_s17 }
  0xda   : > { %419 = vrot.lane.b32.xlu0 %v415_v51, %s878_s19 }
  0xdd   : > { %421 = vrot.lane.b32.xlu1 %v416_v53, %s878_s19 }
  0xde   : > { %434 = vperm.xlu0 %757, %v188_v54  }
  0xe1   : > { %473 = vperm.xlu1 %758, %v188_v54  }
  0xe2   : > { %759 = vset.pattern.permute.xlu0 %v863_v3 }
  0xe3   : > { %510 = vperm.xlu0 %759, %v188_v54  }
  0xe5   : > { %760 = vset.pattern.permute.xlu1 %v862_v1 }
  0xe6   : > { %547 = vperm.xlu1 %760, %v188_v54  }
  0xe7   : > { %761 = vset.pattern.permute.xlu0 %v862_v1 }
 0x12f   : > { %v223_v55 = vpop.permute.xlu1 %222 }
 0x130   : > { %v226_v0 = vrot.slane %v223_v55, 4 }
 0x133   : > { %v225_v56 = vpop.permute.xlu1 %224 }
 0x134   : > { %v252_v57 = vpop.permute.xlu0 %251  ;;  %v227_v62 = vrot.slane %v225_v56, 4  ;;  %v235_v16 = vadd.f32 %v225_v56, %v204_v42  ;;  %v441_v56 = vsub.s32 0, %v1014_v14 }
 0x135   : > { %v255_v5 = vrot.slane %v252_v57, 4 }
 0x136   : > { %v229_v3 = vsel %vm228_vm0, %v226_v0, %v227_v62 }
 0x137   : > { %v254_v58 = vpop.permute.xlu1 %253  ;;  %v231_v11 = vsel %vm230_vm1, %v223_v55, %v229_v3 }
 0x138   : > { %v280_v59 = vpop.permute.xlu0 %279  ;;  %v256_v2 = vrot.slane %v254_v58, 4  ;;  %v234_v19 = vadd.f32 %v231_v11, %v1019_v41  ;;  %v263_v24 = vadd.f32 %v254_v58, %v235_v16  ;;  %v478_v58 = vsub.s32 1, %v1014_v14 }
 0x139   : > { %v283_v8 = vrot.slane %v280_v59, 4 }
 0x13a   : > { %v257_v1 = vsel %vm228_vm0, %v255_v5, %v256_v2  ;;  %v519_v2 = vsub.s32 6, %v1014_v14 }
 0x13b   : > { %v282_v60 = vpop.permute.xlu1 %281  ;;  %v259_v17 = vsel %vm258_vm2, %v252_v57, %v257_v1  ;;  %v445_v57 = vsub.s32 4, %v1014_v14 }
 0x13c   : > { %v308_v61 = vpop.permute.xlu0 %307  ;;  %v284_v6 = vrot.slane %v282_v60, 4  ;;  %v262_v26 = vadd.f32 %v259_v17, %v234_v19  ;;  %v291_v29 = vadd.f32 %v282_v60, %v263_v24  ;;  %v515_v60 = vsub.s32 2, %v1014_v14 }
 0x13d   : > { %v311_v13 = vrot.slane %v308_v61, 4 }
 0x13e   : > { %v285_v12 = vsel %vm228_vm0, %v283_v8, %v284_v6 }
 0x13f   : > { %v310_v63 = vpop.permute.xlu1 %309  ;;  %v287_v25 = vsel %vm286_vm3, %v280_v59, %v285_v12  ;;  %v482_v59 = vsub.s32 5, %v1014_v14 }
 0x140   : > { %v336_v4 = vpop.permute.xlu0 %335  ;;  %v312_v9 = vrot.slane %v310_v63, 4  ;;  %v290_v32 = vadd.f32 %v287_v25, %v262_v26  ;;  %v319_v39 = vadd.f32 %v310_v63, %v291_v29 }
 0x141   : > { %v339_v21 = vrot.slane %v336_v4, 4 }
 0x142   : > { %v313_v20 = vsel %vm228_vm0, %v311_v13, %v312_v9 }
 0x143   : > { %v338_v7 = vpop.permute.xlu1 %337  ;;  %v315_v30 = vsel %vm314_vm4, %v308_v61, %v313_v20  ;;  %v552_v61 = vsub.s32 3, %v1014_v14 }
 0x144   : > { %v364_v10 = vpop.permute.xlu0 %363  ;;  %v340_v15 = vrot.slane %v338_v7, 4  ;;  %v318_v38 = vadd.f32 %v315_v30, %v290_v32  ;;  %v347_v44 = vadd.f32 %v338_v7, %v319_v39  ;;  %v556_v7 = vsub.s32 7, %v1014_v14 }
 0x145   : > { %v367_v28 = vrot.slane %v364_v10, 4 }
 0x146   : > { %v341_v27 = vsel %vm228_vm0, %v339_v21, %v340_v15 }
 0x147   : > { %v366_v18 = vpop.permute.xlu1 %365  ;;  %v343_v36 = vsel %vm342_vm5, %v336_v4, %v341_v27 }
 0x148   : > { %v368_v22 = vrot.slane %v366_v18, 4  ;;  %v392_v23 = vpop.permute.xlu0 %391  ;;  %v346_v43 = vadd.f32 %v343_v36, %v318_v38  ;;  %v375_v49 = vadd.f32 %v366_v18, %v347_v44 }
 0x149   : > { %v395_v34 = vrot.slane %v392_v23, 4 }
 0x14a   : > { %v369_v33 = vsel %vm228_vm0, %v367_v28, %v368_v22 }
 0x14b   : > { %v394_v31 = vpop.permute.xlu1 %393  ;;  %v371_v41 = vsel %vm370_vm6, %v364_v10, %v369_v33 }
 0x14c   : > { %v396_v35 = vrot.slane %v394_v31, 4  ;;  %v420_v37 = vpop.permute.xlu0 %419  ;;  %v374_v48 = vadd.f32 %v371_v41, %v346_v43  ;;  %v403_v53 = vadd.f32 %v394_v31, %v375_v49 }
 0x14d   : > { %v423_v45 = vrot.slane %v420_v37, 4 }
 0x14e   : > { %v397_v40 = vsel %vm228_vm0, %v395_v34, %v396_v35 }
 0x14f   : > { %v422_v42 = vpop.permute.xlu1 %421  ;;  %v399_v47 = vsel %vm398_vm7, %v392_v23, %v397_v40 }
 0x150   : > { %v424_v46 = vrot.slane %v422_v42, 4  ;;  %v402_v52 = vadd.f32 %v399_v47, %v374_v48  ;;  %v431_v55 = vadd.f32 %v422_v42, %v403_v53 }
 0x152   : > { %v425_v50 = vsel %vm228_vm0, %v423_v45, %v424_v46  ;;  %v450_v0 = vrot.slane %v431_v55, %v441_v56  ;;  %v487_v5 = vrot.slane %v431_v55, %v478_v58  ;;  %v524_v8 = vrot.slane %v431_v55, %v515_v60 }
 0x153   : > { %v427_v51 = vsel %vm426_vm8, %v420_v37, %v425_v50  ;;  %v561_v9 = vrot.slane %v431_v55, %v552_v61 }
 0x154   : > { %v430_v54 = vadd.f32 %v427_v51, %v402_v52  ;;  %v465_v12 = vrot.slane %v450_v0, %v441_v56  ;;  %v502_v17 = vrot.slane %v487_v5, %v478_v58  ;;  %v539_v28 = vrot.slane %v524_v8, %v515_v60 }
 0x155   : > { %v576_v40 = vrot.slane %v561_v9, %v552_v61 }
 0x156   : > { %v442_v62 = vrot.slane %v430_v54, %v441_v56  ;;  %v446_v63 = vrot.slane %v430_v54, %v445_v57  ;;  %v479_v4 = vrot.slane %v430_v54, %v478_v58  ;;  %v483_v3 = vrot.slane %v430_v54, %v482_v59 }
 0x157   : > { %v516_v6 = vrot.slane %v430_v54, %v515_v60  ;;  %v520_v13 = vrot.slane %v430_v54, %v519_v2  ;;  %v553_v18 = vrot.slane %v430_v54, %v552_v61  ;;  %v557_v23 = vrot.slane %v430_v54, %v556_v7 }
 0x158   : > { %v457_v10 = vrot.slane %v442_v62, %v441_v56  ;;  %v461_v11 = vrot.slane %v446_v63, %v441_v56  ;;  %v494_v15 = vrot.slane %v479_v4, %v478_v58  ;;  %v498_v16 = vrot.slane %v483_v3, %v478_v58 }
 0x159   : > { %v531_v22 = vrot.slane %v516_v6, %v515_v60  ;;  %v535_v27 = vrot.slane %v520_v13, %v515_v60  ;;  %v568_v36 = vrot.slane %v553_v18, %v552_v61  ;;  %v572_v37 = vrot.slane %v557_v23, %v552_v61 }
 0x15d   : > { %v435_v1 = vpop.permute.xlu0 %434 }
 0x15e   : > { %v466_v19 = vmul.f32 %v457_v10, %v435_v1  ;;  %v467_v20 = vmul.f32 %v461_v11, %v435_v1  ;;  %v468_v24 = vmul.f32 %v465_v12, %v435_v1 }
 0x160   : > { %v474_v21 = vpop.permute.xlu1 %473 }
 0x161   : > { %v503_v25 = vmul.f32 %v494_v15, %v474_v21  ;;  %v504_v14 = vmul.f32 %v498_v16, %v474_v21  ;;  %v505_v26 = vmul.f32 %v502_v17, %v474_v21 }
 0x162   : > { %v511_v29 = vpop.permute.xlu0 %510 }
 0x163   : > { %v506_v30 = vadd.f32 %v503_v25, %v466_v19  ;;  %v507_v31 = vadd.f32 %v504_v14, %v467_v20  ;;  %v508_v32 = vadd.f32 %v505_v26, %v468_v24  ;;  %v540_v33 = vmul.f32 %v531_v22, %v511_v29 }
 0x164   : > { %v541_v34 = vmul.f32 %v535_v27, %v511_v29  ;;  %v542_v35 = vmul.f32 %v539_v28, %v511_v29 }
 0x165   : > { %v543_v38 = vadd.f32 %v540_v33, %v506_v30  ;;  %v548_v39 = vpop.permute.xlu1 %547 }
 0x166   : > { %v544_v41 = vadd.f32 %v541_v34, %v507_v31  ;;  %v545_v42 = vadd.f32 %v542_v35, %v508_v32  ;;  %v577_v43 = vmul.f32 %v568_v36, %v548_v39  ;;  %v578_v44 = vmul.f32 %v572_v37, %v548_v39 }
 0x167   : > { %v579_v45 = vmul.f32 %v576_v40, %v548_v39 }
 0x168   : > { %v580_v46 = vadd.f32 %v577_v43, %v543_v38  ;;  %v581_v47 = vadd.f32 %v578_v44, %v544_v41 }
 0x169   : > { %v582_v48 = vadd.f32 %v579_v45, %v545_v42 }
 0x16a   : > { %583 = vst [vmem:[%s186_s29] sm:$0xff] %v580_v46  ;;  %584 = vst [vmem:[%s186_s29 + $0x8] sm:$0xff] %v581_v47 }
 0x16b   : > { %586 = vst.msk [vmem:[%s186_s29 + $0x10] sm:$0xff] %vm585_vm9, %v582_v48 }
 0x16c   : > { %805 = shalt.err (!%p802_p4)
}
 0x16d   : > { %s806_s28 = scalar_lea.hbm %s1049_s4, 384  ;;  %s810_s17 = scalar_lea.hbm %s1096_s3, 768 }
 0x16e   : > { %p807_p7 = scmp.ne.s32.totalorder %s1049_s4, %s806_s28  ;;  %p811_p0 = scmp.lt.u32.totalorder %s1049_s4, %s1096_s3 }
 0x16f   : > { %p812_p1 = scmp.lt.u32.totalorder %s810_s17, %s806_s28  ;;  %p814_p6 = scmp.lt.u32.totalorder %s806_s28, %s1049_s4 }
 0x170   : > { %p808_p8 = pnand %p807_p7, %p1104_p11 }
 0x171   : > { %p813_p3 = por %p812_p1, %p811_p0 }
 0x172   : > { %p809_p9 = pneg %p808_p8 }
 0x173   : > { %p815_p12 = por %p814_p6, %p813_p3 }
 0x175   : > { %p816_p13 = pnand %p815_p12, %p809_p9 }
 0x177   : > { %819 = shalt.err (!%p816_p13)
}
 0x178   : > { %687 = dma.vmem_to_hbm [thread:$0]  (%p1104_p11), %s1051_s5, 384, %s1049_s4, %s588_s16  }
 0x179 PF: > { %s614_s25 = sand.u32 1, %s846_s12   ;;  %p1105_p5 = scmp.ne.s32.totalorder %s1100_s24, 0 }
 0x17a   : > { %p1106_p10 = scmp.ge.s32.totalorder %s858_s15, 2  ;;  %s615_s26 = scalar_lea.sflag [#allocation4], %s614_s25 }
 0x17c   : > { %p694_p2 = pnand %p1106_p10, %p1105_p5 }
 0x17e   : > { %841 = dma.done.wait (!%p694_p2), %s615_s26, 384  }
 0x17f   : > { %843 = vsyncadd (!%p694_p2), %s615_s26, 4294966912  ;;  %p16_p4 = scmp.ge.s32.totalorder %s925_s18, 4   ;;  %s1107_s12 = smov %s850_s13 }
 0x180   : > { %s1108_s13 = smov %s854_s14  ;;  %s1109_s14 = smov %s937_s21 }
 0x181   : > { %s1110_s15 = smov %s925_s18  ;;  %18 = sbr.rel (!%p16_p4) target bundleno = 5 (0x5), region = 77 }
 0x188   :  { %620 = vsyncpa [#allocation3], 1 }
 0x189   :  { %622 = vsyncpa [#allocation3 + $0x1], 1 }
 0x18a   :  { %623 = vsyncpa [#allocation4], 1 }
 0x18b   :  { %625 = vsyncpa [#allocation4 + $0x1], 1 }

</bundles_post_ra>
